<compile_context>
chip_gen: v7x
topology: tpu7x:2x2x1
jax: 0.10.0
libtpu: 0.0.40
codegen_flags: <defaults>
</compile_context>

<pallas_src>
import jax
import jax.numpy as jnp
from jax.experimental import pallas as pl
from jax.experimental.pallas import tpu as pltpu

_LANE = 128                       # TPU vreg lane width (last block dim).
_MAX_BLOCK_BYTES = 2 * 1024 * 1024  # 2 MiB / block -> 8 MiB total with double buffering.


def _copy_kernel(x_ref, o_ref):
    # Identity pass-through of the current tile.
    o_ref[...] = x_ref[...]


def _pick_block_rows(rows: int, itemsize: int) -> int:
    """Choose the block row count for the (rows, 128) lane-dense view.

    - Small inputs (rows <= 32): one full-array block (block == array dims,
      so the (8, 128) tiling constraint is trivially satisfied).
    - Larger inputs: multiple of 32 rows (safe for bf16/int8 sublane packing),
      capped by _MAX_BLOCK_BYTES, and capped at ~ceil(rows/2) so the grid has
      at least 2 steps (pipeline overlap + v7x megacore sharding).
    """
    if rows <= 32:
        return rows
    max_rows_by_bytes = max(32, (_MAX_BLOCK_BYTES // (_LANE * itemsize)) // 32 * 32)
    half = -(-rows // 2)            # ceil(rows / 2)
    half = -(-half // 32) * 32      # round up to a multiple of 32
    return min(max_rows_by_bytes, half)


@jax.jit
def decoder_forward(x: jax.Array) -> jax.Array:
    """Pallas implementation of Decoder.forward (empty module -> identity)."""
    orig_shape = x.shape
    total = 1
    for d in orig_shape:
        total *= d
    itemsize = jnp.dtype(x.dtype).itemsize

    if total >= _LANE and total % _LANE == 0:
        # Lane-dense 2-D view: (rows, 128). No padding, no output slice.
        rows = total // _LANE
        x2d = x.reshape(rows, _LANE)
        block_rows = _pick_block_rows(rows, itemsize)
        grid = (pl.cdiv(rows, block_rows),)

        out2d = pl.pallas_call(
            _copy_kernel,
            out_shape=jax.ShapeDtypeStruct((rows, _LANE), x.dtype),
            grid=grid,
            in_specs=[pl.BlockSpec((block_rows, _LANE), lambda i: (i, 0))],
            out_specs=pl.BlockSpec((block_rows, _LANE), lambda i: (i, 0)),
            compiler_params=pltpu.CompilerParams(
                dimension_semantics=("parallel",),  # shard grid across TCs (v7x).
            ),
        )(x2d)
        return out2d.reshape(orig_shape)

    # Fallback (size not a multiple of 128): single full-array block, no pad.
    return pl.pallas_call(
        _copy_kernel,
        out_shape=jax.ShapeDtypeStruct(orig_shape, x.dtype),
    )(x)


if __name__ == "__main__":
    key = jax.random.PRNGKey(0)
    # Small NCHW input consistent with a conv-style decoder interface.
    x = jax.random.normal(key, (2, 4, 16, 16), dtype=jnp.float32)

    y = decoder_forward(x)
    jax.block_until_ready(y)

    # Sanity check: identity semantics (shape, dtype, values preserved).
    assert y.shape == x.shape and y.dtype == x.dtype
    assert bool(jnp.all(y == x))

    print("KERNEL_OK")
</pallas_src>

<mosaic_0001>
module attributes {stable_mosaic.version = 11 : i64} {
  func.func @_copy_kernel(%arg0: i32, %arg1: memref<16x128xf32, #tpu.memory_space<vmem>>, %arg2: memref<16x128xf32, #tpu.memory_space<vmem>>) attributes {dimension_semantics = [#tpu.dimension_semantics<parallel>], iteration_bounds = array<i64: 1>, scalar_prefetch = 0 : i64, scratch_operands = 0 : i64, tpu.core_type = #tpu.core_type<tc>, window_params = [{transform_indices = @transform_0, window_bounds = array<i64: 16, 128>}, {transform_indices = @transform_1, window_bounds = array<i64: 16, 128>}]} {
    %c0 = arith.constant 0 : index
    %c0_0 = arith.constant 0 : index
    %0 = vector.load %arg1[%c0, %c0_0] : memref<16x128xf32, #tpu.memory_space<vmem>>, vector<16x128xf32>
    %c0_1 = arith.constant 0 : index
    %c0_2 = arith.constant 0 : index
    %1 = vector.load %arg2[%c0_1, %c0_2] : memref<16x128xf32, #tpu.memory_space<vmem>>, vector<16x128xf32>
    tpu.vector_store %arg2[%c0_1, %c0_2], %0 {strides = array<i32>} : memref<16x128xf32, #tpu.memory_space<vmem>>, vector<16x128xf32>,
    return
  }
  func.func @transform_0(%arg0: i32) -> (i32, i32) {
    %c0_i32 = arith.constant 0 : i32
    %c0_i32_0 = arith.constant 0 : i32
    return %arg0, %c0_i32 : i32, i32
  }
  func.func @transform_1(%arg0: i32) -> (i32, i32) {
    %c0_i32 = arith.constant 0 : i32
    %c0_i32_0 = arith.constant 0 : i32
    return %arg0, %c0_i32 : i32, i32
  }
}

</mosaic_0001>

<bundles_post_ra>
// kernel: decoder_forward.1
= control target key start
LH: loop header
LB: loop body
LE: loop exit
PB: predicated region body
PF: predicated region fallthrough
CT: control target
= control target key end

     0   :  { %s38_s0 = inlined_call_operand.vmem [shape: f32[16,128], index: 0, kind: input, shape index: {}]   ;;  %s39_s1 = inlined_call_operand.vmem [shape: f32[16,128], index: 1, kind: output, shape index: {}]  }
   0x1   :  { %v8_v0 = vld [vmem:[%s38_s0] sm:$0xff]  ;;  %v9_v1 = vld [vmem:[%s38_s0 + $0x8] sm:$0xff] }
   0x2   :  { %10 = vst [vmem:[%s39_s1] sm:$0xff] %v8_v0  ;;  %11 = vst [vmem:[%s39_s1 + $0x8] sm:$0xff] %v9_v1 }

</bundles_post_ra>
